<compile_context>
chip_gen: v7x
topology: tpu7x:2x2x1
jax: 0.10.0
libtpu: 0.0.40
codegen_flags: <defaults>
</compile_context>

<pallas_src>
import functools

import jax
import jax.numpy as jnp
from jax.experimental import pallas as pl
from jax.experimental.pallas import tpu as pltpu


EPS = 1e-12  # torch.nn.functional.normalize default eps


def _netvlad_kernel(x_ref, w_ref, c_ref, o_ref, *, b_tile, matmul_dtype):
    # x_ref : (B_TILE, D, S) channel-major block (B_TILE batch elements)
    # w_ref : (K, D) 1x1-conv (cluster assignment) weights
    # c_ref : (K, D) centroids
    # o_ref : (B_TILE, K, D) normalized VLAD output
    w = w_ref[...].astype(jnp.float32)           # (K, D)
    c = c_ref[...].astype(jnp.float32)           # (K, D)
    w_mm = w.astype(matmul_dtype)                # hoisted out of the batch loop

    for b in range(b_tile):                      # static unroll over the tile
        x = x_ref[b].astype(jnp.float32)         # (D, S)

        # 1) descriptor-wise L2 normalization over D (columns are tokens).
        #    x / max(||x||, eps)  ==  x * rsqrt(max(||x||^2, eps^2))
        sq = jnp.sum(x * x, axis=0, keepdims=True)                  # (1, S)
        xn = x * jax.lax.rsqrt(jnp.maximum(sq, EPS * EPS))          # (D, S)
        xn_mm = xn.astype(matmul_dtype)

        # 2) 1x1 conv == W @ xn  (MXU-native contraction, no transpose),
        #    then softmax over clusters (axis 0), kept in f32.
        logits = jax.lax.dot_general(
            w_mm, xn_mm, (((1,), (0,)), ((), ())),
            preferred_element_type=jnp.float32)                     # (K, S)
        m = jnp.max(logits, axis=0, keepdims=True)
        e = jnp.exp(logits - m)
        a = e / jnp.sum(e, axis=0, keepdims=True)                   # (K, S)

        # 3) vlad[k,d] = sum_s a[k,s]*xn[d,s] - c[k,d]*sum_s a[k,s]
        #    (both-last-dim contraction: MXU-native, no transpose of a)
        weighted = jax.lax.dot_general(
            a.astype(matmul_dtype), xn_mm, (((1,), (1,)), ((), ())),
            preferred_element_type=jnp.float32)                     # (K, D)
        a_sum = jnp.sum(a, axis=1, keepdims=True)                   # (K, 1)
        vlad = weighted - c * a_sum                                 # (K, D)

        # 4) intra-cluster L2 norm (over D), then global L2 norm over K*D.
        vn = jnp.sum(vlad * vlad, axis=1, keepdims=True)            # (K, 1)
        vlad = vlad * jax.lax.rsqrt(jnp.maximum(vn, EPS * EPS))
        g = jnp.sum(vlad * vlad)                                    # scalar
        vlad = vlad * jax.lax.rsqrt(jnp.maximum(g, EPS * EPS))

        o_ref[b] = vlad.astype(o_ref.dtype)


def _pick_b_tile(n, d, s, k, vmem_budget_bytes=6 * 1024 * 1024):
    """Pick how many batch elements to process per grid step."""
    # Rough f32 VMEM working set per batch element (double-buffered input
    # block + xn + logits/a + vlad/output), keep well under the scoped limit.
    per_b = 4 * (3 * d * s + 2 * k * s + 3 * k * d)
    b = max(1, vmem_budget_bytes // per_b)
    b = min(b, 8)                                  # diminishing returns
    if n >= 2:
        b = min(b, max(1, n // 2))                 # keep >=2 grid steps (v7x 2 TCs)
    return int(max(1, min(b, n)))


def netvlad_forward(x_nchw, conv_weight, centroids, *,
                    b_tile=None, matmul_dtype=jnp.bfloat16):
    """x_nchw: (N, D, H, W); conv_weight: (K, D); centroids: (K, D).

    matmul_dtype=jnp.bfloat16 uses bf16 MXU operands with f32 accumulation
    (v6e/v7x fast path); pass jnp.float32 for exact parity with the torch
    reference.
    """
    N, D, H, W = x_nchw.shape
    K = conv_weight.shape[0]
    S = H * W

    # Channel-major flatten only — a free reshape, no HBM transpose pass.
    x_flat = x_nchw.reshape(N, D, S)

    if b_tile is None:
        b_tile = _pick_b_tile(N, D, S, K)
    n_pad = pl.cdiv(N, b_tile) * b_tile
    if n_pad != N:
        x_flat = jnp.pad(x_flat, ((0, n_pad - N), (0, 0), (0, 0)))

    kernel = functools.partial(
        _netvlad_kernel, b_tile=b_tile, matmul_dtype=matmul_dtype)

    vlad = pl.pallas_call(
        kernel,
        out_shape=jax.ShapeDtypeStruct((n_pad, K, D), x_nchw.dtype),
        grid_spec=pltpu.PrefetchScalarGridSpec(
            num_scalar_prefetch=0,
            grid=(n_pad // b_tile,),
            in_specs=[
                pl.BlockSpec((b_tile, D, S), lambda n: (n, 0, 0)),
                pl.BlockSpec((K, D), lambda n: (0, 0)),   # resident weights
                pl.BlockSpec((K, D), lambda n: (0, 0)),   # resident centroids
            ],
            out_specs=pl.BlockSpec((b_tile, K, D), lambda n: (n, 0, 0)),
        ),
        compiler_params=pltpu.CompilerParams(
            dimension_semantics=("parallel",),
            vmem_limit_bytes=32 * 1024 * 1024),
    )(x_flat, conv_weight, centroids)

    return vlad.reshape(n_pad, K * D)[:N]


def netvlad_reference(x_nchw, conv_weight, centroids):
    """Pure-JAX reference mirroring the PyTorch forward, for validation."""
    N, D, H, W = x_nchw.shape
    xn = x_nchw / jnp.maximum(
        jnp.sqrt(jnp.sum(x_nchw ** 2, axis=1, keepdims=True)), EPS)
    x_flat = xn.reshape(N, D, H * W)                                # (N, D, S)
    logits = jnp.einsum("kd,nds->nks", conv_weight, x_flat)         # (N, K, S)
    a = jax.nn.softmax(logits, axis=1)                              # (N, K, S)
    vlad = (jnp.einsum("nks,nds->nkd", a, x_flat)
            - centroids[None] * jnp.sum(a, axis=-1)[..., None])     # (N, K, D)
    vlad = vlad / jnp.maximum(
        jnp.sqrt(jnp.sum(vlad ** 2, axis=2, keepdims=True)), EPS)
    vlad = vlad.reshape(N, -1)
    vlad = vlad / jnp.maximum(
        jnp.sqrt(jnp.sum(vlad ** 2, axis=1, keepdims=True)), EPS)
    return vlad


if __name__ == "__main__":
    # Small shapes consistent with the module: descriptor dim D = 128,
    # clusters K = 64, spatial 8x8, batch 2.
    N, D, H, W = 2, 128, 8, 8
    K = 64

    key = jax.random.PRNGKey(0)
    kx, kw, kc = jax.random.split(key, 3)
    x = jax.random.normal(kx, (N, D, H, W), dtype=jnp.float32)
    # conv: nn.Conv2d(dim, clusters_num, 1, bias=False) -> weight (K, D, 1, 1)
    conv_weight = (jax.random.normal(kw, (K, D), dtype=jnp.float32)
                   * (1.0 / jnp.sqrt(D)))
    # centroids: torch.rand(K, D) -> uniform [0, 1)
    centroids = jax.random.uniform(kc, (K, D), dtype=jnp.float32)

    ref = netvlad_reference(x, conv_weight, centroids)

    # Exact-parity path (f32 MXU operands).
    out_f32 = jax.block_until_ready(
        netvlad_forward(x, conv_weight, centroids, matmul_dtype=jnp.float32))
    assert out_f32.shape == (N, K * D)
    assert jnp.all(jnp.isfinite(out_f32))
    assert jnp.allclose(out_f32, ref, atol=1e-4, rtol=1e-4)

    # Fast path (bf16 MXU operands, f32 accumulation) — v6e/v7x MXU-native.
    out_bf16 = jax.block_until_ready(
        netvlad_forward(x, conv_weight, centroids, matmul_dtype=jnp.bfloat16))
    assert out_bf16.shape == (N, K * D)
    assert jnp.all(jnp.isfinite(out_bf16))
    assert jnp.allclose(out_bf16, ref, atol=2e-2, rtol=2e-2)

    print("KERNEL_OK")
</pallas_src>

<mosaic_0001>
module attributes {stable_mosaic.version = 11 : i64} {
  func.func @_netvlad_kernel(%arg0: i32, %arg1: memref<1x128x64xf32, #tpu.memory_space<vmem>>, %arg2: memref<64x128xf32, #tpu.memory_space<vmem>>, %arg3: memref<64x128xf32, #tpu.memory_space<vmem>>, %arg4: memref<1x64x128xf32, #tpu.memory_space<vmem>>) attributes {dimension_semantics = [#tpu.dimension_semantics<parallel>], iteration_bounds = array<i64: 2>, scalar_prefetch = 0 : i64, scratch_operands = 0 : i64, tpu.core_type = #tpu.core_type<tc>, window_params = [{transform_indices = @transform_0, window_bounds = array<i64: 1, 128, 64>}, {pipeline_mode = #tpu.pipeline_mode<synchronous>, transform_indices = @transform_1, window_bounds = array<i64: 64, 128>}, {pipeline_mode = #tpu.pipeline_mode<synchronous>, transform_indices = @transform_2, window_bounds = array<i64: 64, 128>}, {transform_indices = @transform_3, window_bounds = array<i64: 1, 64, 128>}]} {
    %c0 = arith.constant 0 : index
    %c0_0 = arith.constant 0 : index
    %0 = vector.load %arg2[%c0, %c0_0] : memref<64x128xf32, #tpu.memory_space<vmem>>, vector<64x128xf32>
    %c0_1 = arith.constant 0 : index
    %c0_2 = arith.constant 0 : index
    %1 = vector.load %arg3[%c0_1, %c0_2] : memref<64x128xf32, #tpu.memory_space<vmem>>, vector<64x128xf32>
    %c0_3 = arith.constant 0 : index
    %c0_4 = arith.constant 0 : index
    %c0_5 = arith.constant 0 : index
    %2 = vector.load %arg1[%c0_3, %c0_4, %c0_5] : memref<1x128x64xf32, #tpu.memory_space<vmem>>, vector<1x128x64xf32>
    %3 = vector.shape_cast %2 : vector<1x128x64xf32> to vector<128x64xf32>
    %4 = arith.mulf %3, %3 : vector<128x64xf32>
    %cst = arith.constant dense<0.000000e+00> : vector<64xf32>
    %5 = vector.multi_reduction <add>, %4, %cst [0] : vector<128x64xf32> to vector<64xf32>
    %6 = vector.shape_cast %5 : vector<64xf32> to vector<1x64xf32>
    %cst_6 = arith.constant 1.000000e-24 : f32
    %7 = vector.broadcast %cst_6 : f32 to vector<1x64xf32>
    %8 = arith.maximumf %6, %7 : vector<1x64xf32>
    %9 = math.rsqrt %8 : vector<1x64xf32>
    %10 = vector.broadcast %9 : vector<1x64xf32> to vector<128x64xf32>
    %11 = arith.mulf %3, %10 : vector<128x64xf32>
    %cst_7 = arith.constant dense<0.000000e+00> : vector<64x64xf32>
    %12 = tpu.matmul %0, %11, %cst_7 {dimension_numbers = #tpu.dot_dimension_numbers<[1], [0], [0], [1], [0, 0, 1, 1], [], []>} : vector<64x128xf32>, vector<128x64xf32>, vector<64x64xf32> -> vector<64x64xf32>
    %cst_8 = arith.constant dense<0xFF800000> : vector<64xf32>
    %13 = vector.multi_reduction <maximumf>, %12, %cst_8 [0] : vector<64x64xf32> to vector<64xf32>
    %14 = vector.shape_cast %13 : vector<64xf32> to vector<1x64xf32>
    %15 = vector.broadcast %14 : vector<1x64xf32> to vector<64x64xf32>
    %16 = arith.subf %12, %15 : vector<64x64xf32>
    %17 = math.exp %16 : vector<64x64xf32>
    %cst_9 = arith.constant dense<0.000000e+00> : vector<64xf32>
    %18 = vector.multi_reduction <add>, %17, %cst_9 [0] : vector<64x64xf32> to vector<64xf32>
    %19 = vector.shape_cast %18 : vector<64xf32> to vector<1x64xf32>
    %20 = vector.broadcast %19 : vector<1x64xf32> to vector<64x64xf32>
    %21 = arith.divf %17, %20 : vector<64x64xf32>
    %cst_10 = arith.constant dense<0.000000e+00> : vector<64x128xf32>
    %22 = tpu.matmul %21, %11, %cst_10 {dimension_numbers = #tpu.dot_dimension_numbers<[1], [1], [0], [0], [0, 0, 1, 0], [], []>} : vector<64x64xf32>, vector<128x64xf32>, vector<64x128xf32> -> vector<64x128xf32>
    %cst_11 = arith.constant dense<0.000000e+00> : vector<64xf32>
    %23 = vector.multi_reduction <add>, %21, %cst_11 [1] : vector<64x64xf32> to vector<64xf32>
    %24 = vector.shape_cast %23 : vector<64xf32> to vector<64x1xf32>
    %25 = vector.broadcast %24 : vector<64x1xf32> to vector<64x128xf32>
    %26 = arith.mulf %1, %25 : vector<64x128xf32>
    %27 = arith.subf %22, %26 : vector<64x128xf32>
    %28 = arith.mulf %27, %27 : vector<64x128xf32>
    %cst_12 = arith.constant dense<0.000000e+00> : vector<64xf32>
    %29 = vector.multi_reduction <add>, %28, %cst_12 [1] : vector<64x128xf32> to vector<64xf32>
    %30 = vector.shape_cast %29 : vector<64xf32> to vector<64x1xf32>
    %cst_13 = arith.constant 1.000000e-24 : f32
    %31 = vector.broadcast %cst_13 : f32 to vector<64x1xf32>
    %32 = arith.maximumf %30, %31 : vector<64x1xf32>
    %33 = math.rsqrt %32 : vector<64x1xf32>
    %34 = vector.broadcast %33 : vector<64x1xf32> to vector<64x128xf32>
    %35 = arith.mulf %27, %34 : vector<64x128xf32>
    %36 = arith.mulf %35, %35 : vector<64x128xf32>
    %37 = vector.shape_cast %36 : vector<64x128xf32> to vector<1x64x128xf32>
    %cst_14 = arith.constant dense<0.000000e+00> : vector<1xf32>
    %38 = vector.multi_reduction <add>, %37, %cst_14 [1, 2] : vector<1x64x128xf32> to vector<1xf32>
    %39 = vector.shape_cast %38 : vector<1xf32> to vector<1x1x1xf32>
    %40 = vector.extract %39[0, 0, 0] : f32 from vector<1x1x1xf32>
    %cst_15 = arith.constant 1.000000e-24 : f32
    %41 = arith.maximumf %40, %cst_15 : f32
    %42 = math.rsqrt %41 : f32
    %43 = vector.broadcast %42 : f32 to vector<64x128xf32>
    %44 = arith.mulf %35, %43 : vector<64x128xf32>
    %c0_16 = arith.constant 0 : index
    %c0_17 = arith.constant 0 : index
    %c0_18 = arith.constant 0 : index
    %45 = vector.load %arg4[%c0_16, %c0_17, %c0_18] : memref<1x64x128xf32, #tpu.memory_space<vmem>>, vector<1x64x128xf32>
    %46 = vector.shape_cast %45 : vector<1x64x128xf32> to vector<64x128xf32>
    %47 = vector.shape_cast %44 : vector<64x128xf32> to vector<1x64x128xf32>
    tpu.vector_store %arg4[%c0_16, %c0_17, %c0_18], %47 {strides = array<i32>} : memref<1x64x128xf32, #tpu.memory_space<vmem>>, vector<1x64x128xf32>,
    return
  }
  func.func @transform_0(%arg0: i32) -> (i32, i32, i32) {
    %c0_i32 = arith.constant 0 : i32
    %c0_i32_0 = arith.constant 0 : i32
    %c0_i32_1 = arith.constant 0 : i32
    return %arg0, %c0_i32, %c0_i32_0 : i32, i32, i32
  }
  func.func @transform_1(%arg0: i32) -> (i32, i32) {
    %c0_i32 = arith.constant 0 : i32
    %c0_i32_0 = arith.constant 0 : i32
    %c0_i32_1 = arith.constant 0 : i32
    return %c0_i32, %c0_i32_0 : i32, i32
  }
  func.func @transform_2(%arg0: i32) -> (i32, i32) {
    %c0_i32 = arith.constant 0 : i32
    %c0_i32_0 = arith.constant 0 : i32
    %c0_i32_1 = arith.constant 0 : i32
    return %c0_i32, %c0_i32_0 : i32, i32
  }
  func.func @transform_3(%arg0: i32) -> (i32, i32, i32) {
    %c0_i32 = arith.constant 0 : i32
    %c0_i32_0 = arith.constant 0 : i32
    %c0_i32_1 = arith.constant 0 : i32
    return %arg0, %c0_i32, %c0_i32_0 : i32, i32, i32
  }
}

</mosaic_0001>

<bundles_post_ra>
// kernel: tpu_custom_call.1
= control target key start
LH: loop header
LB: loop body
LE: loop exit
PB: predicated region body
PF: predicated region fallthrough
CT: control target
= control target key end

     0   :  { %8 = vsyncpa [#allocation3], 0  ;;  %s1595_s0 = inlined_call_operand.vmem [shape: f32[2,128,64], index: 0, kind: input, shape index: {}]   ;;  %s1596_s1 = inlined_call_operand.vmem [shape: f32[64,128], index: 1, kind: input, shape index: {}]   ;;  %s1597_s2 = inlined_call_operand.vmem [shape: f32[64,128], index: 2, kind: input, shape index: {}]   ;;  %s1598_s3 = inlined_call_operand.hbm [shape: f32[2,64,128], index: 3, kind: output, shape index: {}]  }
   0x1   :  { %10 = vsyncpa [#allocation3 + $0x1], 0  ;;  %s1265_s12 = smov 0   ;;  %s1267_s13 = smov 0  }
   0x2   :  { %s1269_s14 = smov 0   ;;  %s1271_s15 = smov 0  }
   0x3 LB: > { %s1286_s16 = sadd.s32 4294967295, %s1239_s15   ;;  %s839_s17 = sadd.s32 4294967294, %s1239_s15   ;;  %s1239_s15 = sphi %s1271_s15, %s1606_s15   ;;  %s1235_s14 = sphi %s1269_s14, %s1605_s14   ;;  %s1231_s13 = sphi %s1267_s13, %s1604_s13   ;;  %s1227_s12 = sphi %s1265_s12, %s1603_s12  }
   0x4   : > { %s1290_s18 = sadd.s32 1, %s1239_s15   ;;  %s91_s19 = sadd.s32 1, %s1235_s14 }
   0x5   : > { %s88_s20 = ssub.s32 %s1239_s15, %s1290_s18  ;;  %p101_p0 = scmp.ne.s32.totalorder %s1235_s14, %s1231_s13 }
   0x6   : > { %p89_p1 = scmp.eq.s32.totalorder %s88_s20, 0  ;;  %p102_p2 = scmp.eq.s32.totalorder %s1286_s16, 1 }
   0x7   : > { %p107_p3 = scmp.ne.s32.totalorder %s1231_s13, %s1227_s12  ;;  %p108_p4 = scmp.eq.s32.totalorder %s839_s17, 1 }
   0x8   : > { %s1301_s21 = scalar_select %p89_p1, %s1235_s14, %s91_s19  }
   0x9   : > { %p1303_p5 = por %p102_p2, %p101_p0  ;;  %p1307_p6 = por %p108_p4, %p107_p3 }
   0xa   : > { %p842_p7 = scmp.ge.s32.totalorder %s1239_s15, 1  ;;  %p140_p8 = scmp.lt.s32.totalorder %s1239_s15, 3 }
   0xc   : > { %p141_p9 = pnand %p842_p7, %p140_p8 }
   0xd   : > { %p164_p10 = scmp.lt.s32.totalorder (!%p141_p9), %s1286_s16, 1  ;;  %v169_v0 = vld [vmem:[%s1596_s1] sm:$0xff] (!%p141_p9)  ;;  %vm217_vm0 = vcmask (!%p141_p9), 523264   ;;  %s161_s28 = sand.u32 (!%p141_p9), 1, %s1231_s13  }
   0xe   : > { %144 = sbr.rel (%p141_p9) target bundleno = 1102 (0x44e), region = 32  ;;  %957 = vmatprep.mubr.f32.mxu0 (!%p141_p9), %v169_v0  ;;  %vm1433_vm1 = vmpackc.low (!%p141_p9), %vm217_vm0, %vm217_vm0  ;;  %s843_s29 = sshll.u32 (!%p141_p9), %s161_s28, 6 }
   0xf   : > { %s163_s4 = scalar_lea.vmem (!%p141_p9), [#allocation2], %s843_s29  ;;  %s1242_s11 = smov (!%p141_p9), [#allocation2]  }
  0x10   : > { %s777_s5 = sshll.u32 (!%p141_p9), %s163_s4, 4  ;;  %s1181_s17 = sshll.u32 (!%p141_p9), %s1242_s11, 4  ;;  %s1552_s5 = int_to_ptr.vmem [resolvable:$true] %s777_s5  ;;  %s1182_s17 = int_to_ptr.vmem [resolvable:$false] %s1181_s17 }
  0x11   : > { %s1177_s10 = scalar_lea.vmem (!%p141_p9), %s1552_s5, 1024  ;;  %s1183_s19 = scalar_lea.vmem (!%p141_p9), %s1182_s17, 2048 }
  0x12   : > { %p1178_p11 = scmp.ne.s32.totalorder (!%p141_p9), %s1552_s5, %s1177_s10  ;;  %p1184_p0 = scmp.lt.s32.totalorder (!%p141_p9), %s1552_s5, %s1182_s17 }
  0x13   : > { %p1185_p1 = scmp.lt.s32.totalorder (!%p141_p9), %s1183_s19, %s1177_s10 }
  0x14   : > { %p1179_p12 = pnand (!%p141_p9), %p1178_p11, %p1303_p5 }
  0x15   : > { %s165_s26 = scalar_select %p164_p10, %s1286_s16, 1 }
  0x16   : > { %p1180_p13 = pneg %p1179_p12  ;;  %p1186_p2 = por %p1185_p1, %p1184_p0 }
  0x17   : > { %s875_s27 = sshll.u32 %s165_s26, 7  ;;  %s1241_s26 = smov 1e-24  }
  0x18   : > { %s1321_s30 = scalar_lea.vmem %s1595_s0, %s875_s27  ;;  %p1187_p3 = pnand %p1186_p2, %p1180_p13 }
  0x19   : > { %v1324_v1 = vld [vmem:[%s1321_s30] sm:$0xff]  ;;  %v1327_v2 = vld [vmem:[%s1321_s30 + $0x8] sm:$0xff]  ;;  %v1330_v3 = vld [vmem:[%s1321_s30 + $0x10] sm:$0xff] }
  0x1a   : > { %v1333_v4 = vld [vmem:[%s1321_s30 + $0x18] sm:$0xff]  ;;  %v1336_v5 = vld [vmem:[%s1321_s30 + $0x20] sm:$0xff]  ;;  %v201_v6 = vmul.f32 %v1324_v1, %v1324_v1  ;;  %v202_v7 = vmul.f32 %v1327_v2, %v1327_v2  ;;  %v203_v8 = vmul.f32 %v1330_v3, %v1330_v3  ;;  %v1347_v10 = vld [vmem:[%s1321_s30 + $0x28] sm:$0xff] }
  0x1b   : > { %v204_v9 = vmul.f32 %v1333_v4, %v1333_v4  ;;  %v205_v12 = vmul.f32 %v1336_v5, %v1336_v5  ;;  %v1354_v14 = vld [vmem:[%s1321_s30 + $0x30] sm:$0xff]  ;;  %v206_v16 = vmul.f32 %v1347_v10, %v1347_v10  ;;  %v1361_v19 = vld [vmem:[%s1321_s30 + $0x38] sm:$0xff]  ;;  %v1367_v23 = vld [vmem:[%s1321_s30 + $0x40] sm:$0xff] }
  0x1c   : > { %v218_v11 = vsel %vm217_vm0, %v201_v6, 0.0  ;;  %v219_v13 = vsel %vm217_vm0, %v202_v7, 0.0  ;;  %v221_v17 = vsel %vm217_vm0, %v203_v8, 0.0  ;;  %v207_v21 = vmul.f32 %v1354_v14, %v1354_v14  ;;  %v1373_v27 = vld [vmem:[%s1321_s30 + $0x48] sm:$0xff]  ;;  %v1379_v31 = vld [vmem:[%s1321_s30 + $0x50] sm:$0xff]  ;;  %v196_v35 = vld [vmem:[%s1321_s30 + $0x58] sm:$0xff] }
  0x1d   : > { %v220_v15 = vadd.f32 %v219_v13, %v218_v11  ;;  %v223_v18 = vsel %vm217_vm0, %v204_v9, 0.0  ;;  %v225_v22 = vsel %vm217_vm0, %v205_v12, 0.0  ;;  %v208_v25 = vmul.f32 %v1361_v19, %v1361_v19  ;;  %v197_v39 = vld [vmem:[%s1321_s30 + $0x60] sm:$0xff]  ;;  %v198_v43 = vld [vmem:[%s1321_s30 + $0x68] sm:$0xff]  ;;  %v199_v47 = vld [vmem:[%s1321_s30 + $0x70] sm:$0xff] }
  0x1e   : > { %v227_v26 = vsel %vm217_vm0, %v206_v16, 0.0  ;;  %v209_v29 = vmul.f32 %v1367_v23, %v1367_v23  ;;  %v229_v30 = vsel %vm217_vm0, %v207_v21, 0.0  ;;  %v210_v33 = vmul.f32 %v1373_v27, %v1373_v27  ;;  %v200_v51 = vld [vmem:[%s1321_s30 + $0x78] sm:$0xff]  ;;  %s876_s30 = sshll.u32 %s1286_s16, 10  ;;  %s1554_s16 = scalar_lea.sflag [#allocation3], %s161_s28 }
  0x1f   : > { %v222_v20 = vadd.f32 %v221_v17, %v220_v15  ;;  %v231_v34 = vsel %vm217_vm0, %v208_v25, 0.0  ;;  %v211_v37 = vmul.f32 %v1379_v31, %v1379_v31  ;;  %v212_v41 = vmul.f32 %v196_v35, %v196_v35  ;;  %s1550_s9 = scalar_lea.hbm %s1598_s3, %s876_s30 }
  0x20   : > { %v233_v38 = vsel %vm217_vm0, %v209_v29, 0.0  ;;  %v235_v42 = vsel %vm217_vm0, %v210_v33, 0.0  ;;  %v213_v45 = vmul.f32 %v197_v39, %v197_v39  ;;  %v214_v49 = vmul.f32 %v198_v43, %v198_v43 }
  0x21   : > { %v224_v24 = vadd.f32 %v223_v18, %v222_v20  ;;  %v237_v46 = vsel %vm217_vm0, %v211_v37, 0.0  ;;  %v239_v50 = vsel %vm217_vm0, %v212_v41, 0.0  ;;  %v215_v53 = vmul.f32 %v199_v47, %v199_v47  ;;  %v175_v37 = vld [vmem:[%s1596_s1 + $0x30] sm:$0xff] }
  0x22   : > { %v241_v54 = vsel %vm217_vm0, %v213_v45, 0.0  ;;  %v216_v56 = vmul.f32 %v200_v51, %v200_v51  ;;  %v243_v57 = vsel %vm217_vm0, %v214_v49, 0.0 }
  0x23   : > { %v226_v28 = vadd.f32 %v225_v22, %v224_v24  ;;  %v245_v59 = vsel %vm217_vm0, %v215_v53, 0.0 }
  0x24   : > { %v247_v61 = vsel %vm217_vm0, %v216_v56, 0.0 }
  0x25   : > { %v228_v32 = vadd.f32 %v227_v26, %v226_v28 }
  0x27   : > { %v230_v36 = vadd.f32 %v229_v30, %v228_v32 }
  0x29   : > { %v232_v40 = vadd.f32 %v231_v34, %v230_v36  ;;  %v172_v34 = vld [vmem:[%s1596_s1 + $0x18] sm:$0xff]  ;;  %v174_v36 = vld [vmem:[%s1596_s1 + $0x28] sm:$0xff] }
  0x2b   : > { %v234_v44 = vadd.f32 %v233_v38, %v232_v40  ;;  %v176_v38 = vld [vmem:[%s1596_s1 + $0x38] sm:$0xff] }
  0x2d   : > { %v236_v48 = vadd.f32 %v235_v42, %v234_v44 }
  0x2f   : > { %v238_v52 = vadd.f32 %v237_v46, %v236_v48 }
  0x31   : > { %v240_v55 = vadd.f32 %v239_v50, %v238_v52 }
  0x33   : > { %v242_v58 = vadd.f32 %v241_v54, %v240_v55 }
  0x35   : > { %v244_v60 = vadd.f32 %v243_v57, %v242_v58 }
  0x37   : > { %v246_v62 = vadd.f32 %v245_v59, %v244_v60 }
  0x39   : > { %v248_v63 = vadd.f32 %v247_v61, %v246_v62 }
  0x3b   : > { %v249_v0 = vrot.slane %v248_v63, 4 }
  0x3d   : > { %v250_v6 = vadd.f32 %v249_v0, %v248_v63 }
  0x3f   : > { %v251_v7 = vrot.slane %v250_v6, 2 }
  0x41   : > { %v252_v8 = vadd.f32 %v251_v7, %v250_v6 }
  0x43   : > { %v253_v9 = vrot.slane %v252_v8, 1 }
  0x45   : > { %v254_v11 = vadd.f32 %v253_v9, %v252_v8 }
  0x47   : > { %v255_v12 = vmax.f32 %v254_v11, 1e-24 }
  0x49   : > { %1139 = vrsqrt.f32 %v255_v12 }
  0x53   : > { %v1140_v13 = vpop.eup %1139 }
  0x54   : > { %v257_v15 = vmul.f32 %v1140_v13, %v1324_v1  ;;  %v258_v16 = vmul.f32 %v1140_v13, %v1327_v2  ;;  %v259_v17 = vmul.f32 %v1140_v13, %v1330_v3  ;;  %v260_v18 = vmul.f32 %v1140_v13, %v1333_v4 }
  0x55   : > { %v261_v22 = vmul.f32 %v1140_v13, %v1336_v5  ;;  %v262_v24 = vmul.f32 %v1140_v13, %v1347_v10  ;;  %v263_v26 = vmul.f32 %v1140_v13, %v1354_v14  ;;  %v264_v1 = vmul.f32 %v1140_v13, %v1361_v19 }
  0x56   : > { %v1013_v20 = vpack.c.bf16 %v258_v16, %v257_v15  ;;  %v1017_v21 = vpack.c.bf16 %v260_v18, %v259_v17  ;;  %v265_v3 = vmul.f32 %v1140_v13, %v1367_v23  ;;  %v266_v4 = vmul.f32 %v1140_v13, %v1373_v27  ;;  %v170_v27 = vld [vmem:[%s1596_s1 + $0x8] sm:$0xff] }
  0x57   : > { %v1021_v25 = vpack.c.bf16 %v262_v24, %v261_v22  ;;  %v1025_v2 = vpack.c.bf16 %v264_v1, %v263_v26  ;;  %v267_v10 = vmul.f32 %v1140_v13, %v1379_v31  ;;  %v268_v28 = vmul.f32 %v1140_v13, %v196_v35  ;;  %v171_v31 = vld [vmem:[%s1596_s1 + $0x10] sm:$0xff]  ;;  %v173_v35 = vld [vmem:[%s1596_s1 + $0x20] sm:$0xff] }
  0x58   : > { %1014 = vmatprep.subr.bf16.mxu0 %v1013_v20  ;;  %v1029_v5 = vpack.c.bf16 %v266_v4, %v265_v3  ;;  %v269_v30 = vmul.f32 %v1140_v13, %v197_v39  ;;  %v270_v14 = vmul.f32 %v1140_v13, %v198_v43  ;;  %v271_v32 = vmul.f32 %v1140_v13, %v199_v47 }
  0x59   : > { %1016 = vmatpush3.bf16.msra.mxu0 %v1013_v20  ;;  %v1033_v29 = vpack.c.bf16 %v268_v28, %v267_v10  ;;  %v272_v33 = vmul.f32 %v1140_v13, %v200_v51  ;;  %1047 = vmatprep.subr.msk.bf16.mxu1 %vm1433_vm1, %v1013_v20 }
  0x5a   : > { %1018 = vmatprep.subr.bf16.mxu0 %v1017_v21  ;;  %v1037_v19 = vpack.c.bf16 %v270_v14, %v269_v30  ;;  %1050 = vmatpush3.bf16.xpose.msk.msra.mxu1 %vm1433_vm1, %v1013_v20 }
  0x5b   : > { %v1041_v23 = vpack.c.bf16 %v272_v33, %v271_v32  ;;  %1053 = vmatprep.subr.msk.bf16.mxu1 %vm1433_vm1, %v1017_v21 }
  0x5d   : > { %1020 = vmatpush3.bf16.msra.mxu0 %v1017_v21 }
  0x5e   : > { %1022 = vmatprep.subr.bf16.mxu0 %v1021_v25 }
  0x61   : > { %1024 = vmatpush3.bf16.msra.mxu0 %v1021_v25 }
  0x62   : > { %1026 = vmatprep.subr.bf16.mxu0 %v1025_v2  ;;  %1056 = vmatpush3.bf16.xpose.msk.msra.mxu1 %vm1433_vm1, %v1017_v21 }
  0x63   : > { %1059 = vmatprep.subr.msk.bf16.mxu1 %vm1433_vm1, %v1021_v25 }
  0x65   : > { %1028 = vmatpush3.bf16.msra.mxu0 %v1025_v2 }
  0x66   : > { %1030 = vmatprep.subr.bf16.mxu0 %v1029_v5 }
  0x69   : > { %1032 = vmatpush3.bf16.msra.mxu0 %v1029_v5 }
  0x6a   : > { %1034 = vmatprep.subr.bf16.mxu0 %v1033_v29  ;;  %1062 = vmatpush3.bf16.xpose.msk.msra.mxu1 %vm1433_vm1, %v1021_v25 }
  0x6b   : > { %1065 = vmatprep.subr.msk.bf16.mxu1 %vm1433_vm1, %v1025_v2 }
  0x6d   : > { %1036 = vmatpush3.bf16.msra.mxu0 %v1033_v29 }
  0x6e   : > { %1038 = vmatprep.subr.bf16.mxu0 %v1037_v19 }
  0x71   : > { %1040 = vmatpush3.bf16.msra.mxu0 %v1037_v19 }
  0x72   : > { %1042 = vmatprep.subr.bf16.mxu0 %v1041_v23  ;;  %1068 = vmatpush3.bf16.xpose.msk.msra.mxu1 %vm1433_vm1, %v1025_v2 }
  0x73   : > { %1071 = vmatprep.subr.msk.bf16.mxu1 %vm1433_vm1, %v1029_v5 }
  0x75   : > { %1044 = vmatpush3.bf16.msra.mxu0 %v1041_v23 }
  0x78   : > { %958 = vmatmul.mubr.f32.vlgmr.msra.gmra.mrb[0].mxu0 %v170_v27 }
  0x79   : > { %960 = vmatprep.mubr.f32.mxu0 %v171_v31 }
  0x7a   : > { %1074 = vmatpush3.bf16.xpose.msk.msra.mxu1 %vm1433_vm1, %v1029_v5 }
  0x7b   : > { %1077 = vmatprep.subr.msk.bf16.mxu1 %vm1433_vm1, %v1033_v29 }
  0x7c   : > { %961 = vmatmul.mubr.f32.gmra.mrb[2].mxu0 %v172_v34 }
  0x7d   : > { %963 = vmatprep.mubr.f32.mxu0 %v173_v35 }
  0x80   : > { %964 = vmatmul.mubr.f32.gmra.mrb[4].mxu0 %v174_v36 }
  0x81   : > { %966 = vmatprep.mubr.f32.mxu0 %v175_v37 }
  0x82   : > { %1080 = vmatpush3.bf16.xpose.msk.msra.mxu1 %vm1433_vm1, %v1033_v29 }
  0x83   : > { %1083 = vmatprep.subr.msk.bf16.mxu1 %vm1433_vm1, %v1037_v19 }
  0x84   : > { %967 = vmatmul.mubr.f32.gmra.mrb[6].mxu0 %v176_v38 }
  0x8a   : > { %1086 = vmatpush3.bf16.xpose.msk.msra.mxu1 %vm1433_vm1, %v1037_v19 }
  0x8b   : > { %1089 = vmatprep.subr.msk.bf16.mxu1 %vm1433_vm1, %v1041_v23 }
  0x92   : > { %1092 = vmatpush3.bf16.xpose.msk.msra.mxu1 %vm1433_vm1, %v1041_v23 }
 0x14b   : > { %v959_v40 = vpop.f32.mrb[0].mxu0 }
 0x14c   : > { %v339_v41 = vpop.f32.mrb[1].mxu0  ;;  %v379_v45 = vsel %vm217_vm0, %v959_v40, -inf }
 0x14d   : > { %v378_v48 = vsel %vm217_vm0, %v339_v41, -inf }
 0x14f   : > { %v962_v42 = vpop.f32.mrb[2].mxu0 }
 0x150   : > { %v349_v43 = vpop.f32.mrb[3].mxu0  ;;  %v381_v53 = vsel %vm217_vm0, %v962_v42, -inf }
 0x151   : > { %v380_v57 = vsel %vm217_vm0, %v349_v43, -inf }
 0x153   : > { %v965_v44 = vpop.f32.mrb[4].mxu0 }
 0x154   : > { %v384_v46 = vsel %vm217_vm0, %v965_v44, -inf  ;;  %v359_v47 = vpop.f32.mrb[5].mxu0 }
 0x155   : > { %v385_v49 = vmax.f32 %v379_v45, %v384_v46  ;;  %v382_v50 = vsel %vm217_vm0, %v359_v47, -inf }
 0x156   : > { %v383_v51 = vmax.f32 %v378_v48, %v382_v50 }
 0x157   : > { %v968_v52 = vpop.f32.mrb[6].mxu0 }
 0x158   : > { %v390_v54 = vmax.f32 %v383_v51, %v385_v49  ;;  %v388_v55 = vsel %vm217_vm0, %v968_v52, -inf  ;;  %v369_v56 = vpop.f32.mrb[7].mxu0 }
 0x159   : > { %v389_v58 = vmax.f32 %v381_v53, %v388_v55  ;;  %v386_v59 = vsel %vm217_vm0, %v369_v56, -inf }
 0x15a   : > { %v387_v60 = vmax.f32 %v380_v57, %v386_v59 }
 0x15c   : > { %v391_v61 = vmax.f32 %v387_v60, %v389_v58 }
 0x15e   : > { %v392_v62 = vmax.f32 %v390_v54, %v391_v61 }
 0x160   : > { %v393_v63 = vrot.slane %v392_v62, 4 }
 0x162   : > { %v394_v0 = vmax.f32 %v392_v62, %v393_v63 }
 0x164   : > { %v395_v6 = vrot.slane %v394_v0, 2 }
 0x166   : > { %v396_v7 = vmax.f32 %v394_v0, %v395_v6 }
 0x168   : > { %v397_v8 = vrot.slane %v396_v7, 1 }
 0x16a   : > { %v398_v9 = vmax.f32 %v396_v7, %v397_v8 }
 0x16c   : > { %v404_v11 = vsub.f32 %v965_v44, %v398_v9  ;;  %v405_v12 = vsub.f32 %v369_v56, %v398_v9  ;;  %v406_v13 = vsub.f32 %v968_v52, %v398_v9  ;;  %v399_v15 = vsub.f32 %v339_v41, %v398_v9 }
 0x16d   : > { %v400_v16 = vsub.f32 %v959_v40, %v398_v9  ;;  %v401_v17 = vsub.f32 %v349_v43, %v398_v9  ;;  %v402_v18 = vsub.f32 %v962_v42, %v398_v9  ;;  %v403_v20 = vsub.f32 %v359_v47, %v398_v9 }
 0x16e   : > { %v407_v21 = vmul.f32 1.442695, %v399_v15  ;;  %v417_v1 = vmul.f32 1.442695, %v404_v11  ;;  %v419_v2 = vmul.f32 1.442695, %v405_v12 }
 0x16f   : > { %v409_v22 = vmul.f32 1.442695, %v400_v16  ;;  %v411_v24 = vmul.f32 1.442695, %v401_v17  ;;  %v413_v25 = vmul.f32 1.442695, %v402_v18 }
 0x170   : > { %1141 = vpow2.f32 %v407_v21  ;;  %v415_v26 = vmul.f32 1.442695, %v403_v20  ;;  %v421_v3 = vmul.f32 1.442695, %v406_v13  ;;  %v178_v12 = vld [vmem:[%s1597_s2 + $0x8] sm:$0xff]  ;;  %v177_v15 = vld [vmem:[%s1597_s2] sm:$0xff] }
 0x171   : > { %1143 = vpow2.f32 %v409_v22  ;;  %v180_v18 = vld [vmem:[%s1597_s2 + $0x18] sm:$0xff]  ;;  %v179_v21 = vld [vmem:[%s1597_s2 + $0x10] sm:$0xff] }
 0x172   : > { %1145 = vpow2.f32 %v411_v24 }
 0x173   : > { %1147 = vpow2.f32 %v413_v25 }
 0x174   : > { %1149 = vpow2.f32 %v415_v26 }
 0x175   : > { %1151 = vpow2.f32 %v417_v1 }
 0x176   : > { %1153 = vpow2.f32 %v419_v2 }
 0x177   : > { %1155 = vpow2.f32 %v421_v3 }
 0x17a   : > { %v1142_v4 = vpop.eup %1141 }
 0x17b   : > { %v1144_v5 = vpop.eup %1143  ;;  %v423_v10 = vsel %vm217_vm0, %v1142_v4, 0.0 }
 0x17c   : > { %v1146_v28 = vpop.eup %1145  ;;  %v424_v29 = vsel %vm217_vm0, %v1144_v5, 0.0 }
 0x17d   : > { %v1148_v30 = vpop.eup %1147  ;;  %v425_v14 = vadd.f32 %v424_v29, %v423_v10  ;;  %v426_v19 = vsel %vm217_vm0, %v1146_v28, 0.0  ;;  %v181_v29 = vld [vmem:[%s1597_s2 + $0x20] sm:$0xff] }
 0x17e   : > { %v1150_v32 = vpop.eup %1149  ;;  %v428_v23 = vsel %vm217_vm0, %v1148_v30, 0.0 }
 0x17f   : > { %v427_v33 = vadd.f32 %v426_v19, %v425_v14  ;;  %v1152_v27 = vpop.eup %1151  ;;  %v430_v34 = vsel %vm217_vm0, %v1150_v32, 0.0 }
 0x180   : > { %v1154_v35 = vpop.eup %1153  ;;  %v432_v37 = vsel %vm217_vm0, %v1152_v27, 0.0 }
 0x181   : > { %v429_v31 = vadd.f32 %v428_v23, %v427_v33  ;;  %v1156_v38 = vpop.eup %1155  ;;  %v434_v40 = vsel %vm217_vm0, %v1154_v35, 0.0 }
 0x182   : > { %v436_v42 = vsel %vm217_vm0, %v1156_v38, 0.0 }
 0x183   : > { %v431_v36 = vadd.f32 %v430_v34, %v429_v31 }
 0x185   : > { %v433_v39 = vadd.f32 %v432_v37, %v431_v36  ;;  %v183_v36 = vld [vmem:[%s1597_s2 + $0x30] sm:$0xff] }
 0x187   : > { %v435_v41 = vadd.f32 %v434_v40, %v433_v39 }
 0x189   : > { %v437_v43 = vadd.f32 %v436_v42, %v435_v41 }
 0x18b   : > { %v438_v44 = vrot.slane %v437_v43, 4 }
 0x18d   : > { %v439_v45 = vadd.f32 %v438_v44, %v437_v43 }
 0x18f   : > { %v440_v46 = vrot.slane %v439_v45, 2 }
 0x191   : > { %v441_v47 = vadd.f32 %v440_v46, %v439_v45 }
 0x193   : > { %v442_v48 = vrot.slane %v441_v47, 1 }
 0x195   : > { %v443_v49 = vadd.f32 %v442_v48, %v441_v47 }
 0x197   : > { %1157 = vrcp.f32 %v443_v49 }
 0x1a1   : > { %v1158_v50 = vpop.eup %1157 }
 0x1a2   : > { %v445_v51 = vmul.f32 %v1158_v50, %v1142_v4  ;;  %v447_v52 = vmul.f32 %v1158_v50, %v1146_v28  ;;  %v446_v53 = vmul.f32 %v1158_v50, %v1144_v5  ;;  %v448_v54 = vmul.f32 %v1158_v50, %v1148_v30  ;;  %v182_v5 = vld [vmem:[%s1597_s2 + $0x28] sm:$0xff] }
 0x1a3   : > { %v449_v55 = vmul.f32 %v1158_v50, %v1150_v32  ;;  %v450_v56 = vmul.f32 %v1158_v50, %v1152_v27  ;;  %v451_v57 = vmul.f32 %v1158_v50, %v1154_v35  ;;  %v452_v58 = vmul.f32 %v1158_v50, %v1156_v38  ;;  %v184_v27 = vld [vmem:[%s1597_s2 + $0x38] sm:$0xff] }
 0x1a4   : > { %1001 = vmatprep.mubr.msk.f32.mxu1 %vm217_vm0, %v445_v51  ;;  %v636_v59 = vsel %vm217_vm0, %v447_v52, 0.0  ;;  %v630_v60 = vsel %vm217_vm0, %v445_v51, 0.0  ;;  %v639_v61 = vsel %vm217_vm0, %v448_v54, 0.0  ;;  %v633_v62 = vsel %vm217_vm0, %v446_v53, 0.0 }
 0x1a5   : > { %637 = vadd.xlane.f32.xlu1 %v636_v59  ;;  %631 = vadd.xlane.f32.xlu0 %v630_v60  ;;  %v645_v63 = vsel %vm217_vm0, %v450_v56, 0.0  ;;  %v642_v0 = vsel %vm217_vm0, %v449_v55, 0.0  ;;  %v651_v6 = vsel %vm217_vm0, %v452_v58, 0.0  ;;  %v648_v7 = vsel %vm217_vm0, %v451_v57, 0.0 }
 0x1a6   : > { %1002 = vmatmul.mubr.msk.f32.vlgmr.msra.gmra.mrb[0].mxu1 %vm217_vm0, %v446_v53 }
 0x1a7   : > { %1004 = vmatprep.mubr.msk.f32.mxu1 %vm217_vm0, %v447_v52 }
 0x1a9   : > { %640 = vadd.xlane.f32.xlu1 %v639_v61  ;;  %634 = vadd.xlane.f32.xlu0 %v633_v62 }
 0x1aa   : > { %1005 = vmatmul.mubr.msk.f32.gmra.mrb[2].mxu1 %vm217_vm0, %v448_v54 }
 0x1ab   : > { %1007 = vmatprep.mubr.msk.f32.mxu1 %vm217_vm0, %v449_v55 }
 0x1ad   : > { %646 = vadd.xlane.f32.xlu1 %v645_v63  ;;  %643 = vadd.xlane.f32.xlu0 %v642_v0 }
 0x1ae   : > { %1008 = vmatmul.mubr.msk.f32.gmra.mrb[4].mxu1 %vm217_vm0, %v450_v56 }
 0x1af   : > { %1010 = vmatprep.mubr.msk.f32.mxu1 %vm217_vm0, %v451_v57 }
 0x1b1   : > { %652 = vadd.xlane.f32.xlu1 %v651_v6  ;;  %649 = vadd.xlane.f32.xlu0 %v648_v7 }
 0x1b2   : > { %1011 = vmatmul.mubr.msk.f32.gmra.mrb[6].mxu1 %vm217_vm0, %v452_v58 }
 0x232   : > { %v638_v8 = vpop.xlane.xlu1 %637  ;;  %v632_v9 = vpop.xlane.xlu0 %631 }
 0x233   : > { %v654_v17 = vmul.f32 %v632_v9, %v177_v15  ;;  %v656_v4 = vmul.f32 %v638_v8, %v179_v21 }
 0x236   : > { %v641_v11 = vpop.xlane.xlu1 %640  ;;  %v635_v13 = vpop.xlane.xlu0 %634 }
 0x237   : > { %v655_v16 = vmul.f32 %v635_v13, %v178_v12  ;;  %v657_v1 = vmul.f32 %v641_v11, %v180_v18 }
 0x23a   : > { %v647_v25 = vpop.xlane.xlu1 %646  ;;  %v644_v2 = vpop.xlane.xlu0 %643 }
 0x23b   : > { %v659_v32 = vmul.f32 %v647_v25, %v182_v5  ;;  %v658_v23 = vmul.f32 %v644_v2, %v181_v29 }
 0x23e   : > { %v653_v31 = vpop.xlane.xlu1 %652  ;;  %v650_v37 = vpop.xlane.xlu0 %649 }
 0x23f   : > { %v661_v41 = vmul.f32 %v653_v31, %v184_v27  ;;  %v660_v43 = vmul.f32 %v650_v37, %v183_v36 }
 0x279   : > { %v1003_v20 = vpop.f32.mrb[0].mxu1 }
 0x27a   : > { %v1513_v22 = vsub.f32 %v1003_v20, %v655_v16  ;;  %v591_v24 = vpop.f32.mrb[1].mxu1 }
 0x27b   : > { %v1515_v26 = vsub.f32 %v591_v24, %v654_v17 }
 0x27c   : > { %v671_v3 = vmul.f32 %v1513_v22, %v1513_v22 }
 0x27d   : > { %v1006_v10 = vpop.f32.mrb[2].mxu1  ;;  %v670_v28 = vmul.f32 %v1515_v26, %v1515_v26 }
 0x27e   : > { %v1527_v30 = vsub.f32 %v1006_v10, %v657_v1  ;;  %680 = vadd.xlane.f32.xlu1 %v671_v3  ;;  %v601_v14 = vpop.f32.mrb[3].mxu1 }
 0x27f   : > { %v1529_v19 = vsub.f32 %v601_v14, %v656_v4  ;;  %678 = vadd.xlane.f32.xlu0 %v670_v28 }
 0x280   : > { %v673_v33 = vmul.f32 %v1527_v30, %v1527_v30 }
 0x281   : > { %v1009_v34 = vpop.f32.mrb[4].mxu1  ;;  %v672_v35 = vmul.f32 %v1529_v19, %v1529_v19 }
 0x282   : > { %v667_v38 = vsub.f32 %v1009_v34, %v659_v32  ;;  %684 = vadd.xlane.f32.xlu1 %v673_v33  ;;  %v611_v39 = vpop.f32.mrb[5].mxu1 }
 0x283   : > { %v666_v40 = vsub.f32 %v611_v39, %v658_v23  ;;  %682 = vadd.xlane.f32.xlu0 %v672_v35 }
 0x284   : > { %v675_v42 = vmul.f32 %v667_v38, %v667_v38 }
 0x285   : > { %v1012_v44 = vpop.f32.mrb[6].mxu1  ;;  %v674_v45 = vmul.f32 %v666_v40, %v666_v40 }
 0x286   : > { %v669_v46 = vsub.f32 %v1012_v44, %v661_v41  ;;  %688 = vadd.xlane.f32.xlu1 %v675_v42  ;;  %v621_v47 = vpop.f32.mrb[7].mxu1 }
 0x287   : > { %v668_v48 = vsub.f32 %v621_v47, %v660_v43  ;;  %686 = vadd.xlane.f32.xlu0 %v674_v45 }
 0x288   : > { %v677_v49 = vmul.f32 %v669_v46, %v669_v46 }
 0x289   : > { %v676_v50 = vmul.f32 %v668_v48, %v668_v48 }
 0x28a   : > { %692 = vadd.xlane.f32.xlu1 %v677_v49 }
 0x28b   : > { %690 = vadd.xlane.f32.xlu0 %v676_v50 }
 0x30b   : > { %v681_v51 = vpop.xlane.xlu1 %680 }
 0x30c   : > { %v695_v52 = vmax.f32 %v681_v51, 1e-24  ;;  %v679_v53 = vpop.xlane.xlu0 %678 }
 0x30d   : > { %v694_v54 = vmax.f32 %v679_v53, 1e-24 }
 0x30e   : > { %1159 = vrsqrt.f32 %v695_v52 }
 0x30f   : > { %1161 = vrsqrt.f32 %v694_v54  ;;  %v685_v55 = vpop.xlane.xlu1 %684 }
 0x310   : > { %v697_v56 = vmax.f32 %v685_v55, 1e-24  ;;  %v683_v57 = vpop.xlane.xlu0 %682 }
 0x311   : > { %v696_v58 = vmax.f32 %v683_v57, 1e-24 }
 0x312   : > { %1163 = vrsqrt.f32 %v697_v56 }
 0x313   : > { %1165 = vrsqrt.f32 %v696_v58  ;;  %v689_v59 = vpop.xlane.xlu1 %688 }
 0x314   : > { %v699_v60 = vmax.f32 %v689_v59, 1e-24  ;;  %v687_v61 = vpop.xlane.xlu0 %686 }
 0x315   : > { %v698_v62 = vmax.f32 %v687_v61, 1e-24 }
 0x316   : > { %1167 = vrsqrt.f32 %v699_v60 }
 0x317   : > { %1169 = vrsqrt.f32 %v698_v62  ;;  %v693_v63 = vpop.xlane.xlu1 %692 }
 0x318   : > { %v1160_v0 = vpop.eup %1159  ;;  %v701_v6 = vmax.f32 %v693_v63, 1e-24  ;;  %v691_v7 = vpop.xlane.xlu0 %690 }
 0x319   : > { %v1162_v8 = vpop.eup %1161  ;;  %v711_v9 = vmul.f32 %v1160_v0, %v1513_v22  ;;  %v700_v11 = vmax.f32 %v691_v7, 1e-24 }
 0x31a   : > { %v710_v12 = vmul.f32 %v1162_v8, %v1515_v26  ;;  %1171 = vrsqrt.f32 %v701_v6 }
 0x31b   : > { %1173 = vrsqrt.f32 %v700_v11  ;;  %v719_v15 = vmul.f32 %v711_v9, %v711_v9 }
 0x31c   : > { %v1164_v13 = vpop.eup %1163  ;;  %v718_v16 = vmul.f32 %v710_v12, %v710_v12 }
 0x31d   : > { %v1166_v17 = vpop.eup %1165  ;;  %v713_v18 = vmul.f32 %v1164_v13, %v1527_v30 }
 0x31e   : > { %v712_v20 = vmul.f32 %v1166_v17, %v1529_v19  ;;  %v726_v25 = vadd.f32 %v719_v15, %v718_v16 }
 0x31f   : > { %v721_v22 = vmul.f32 %v713_v18, %v713_v18 }
 0x320   : > { %v1168_v21 = vpop.eup %1167  ;;  %v720_v24 = vmul.f32 %v712_v20, %v712_v20 }
 0x321   : > { %v1170_v1 = vpop.eup %1169  ;;  %v715_v3 = vmul.f32 %v1168_v21, %v667_v38 }
 0x322   : > { %v714_v2 = vmul.f32 %v1170_v1, %v666_v40  ;;  %v727_v4 = vadd.f32 %v726_v25, %v720_v24 }
 0x323   : > { %v723_v32 = vmul.f32 %v715_v3, %v715_v3 }
 0x324   : > { %v1172_v5 = vpop.eup %1171  ;;  %v722_v26 = vmul.f32 %v714_v2, %v714_v2  ;;  %v728_v10 = vadd.f32 %v727_v4, %v721_v22 }
 0x325   : > { %v1174_v28 = vpop.eup %1173  ;;  %v717_v14 = vmul.f32 %v1172_v5, %v669_v46 }
 0x326   : > { %v716_v29 = vmul.f32 %v1174_v28, %v668_v48  ;;  %v729_v33 = vadd.f32 %v728_v10, %v722_v26 }
 0x327   : > { %v725_v27 = vmul.f32 %v717_v14, %v717_v14 }
 0x328   : > { %v724_v23 = vmul.f32 %v716_v29, %v716_v29  ;;  %v730_v30 = vadd.f32 %v729_v33, %v723_v32 }
 0x32a   : > { %v731_v19 = vadd.f32 %v730_v30, %v724_v23 }
 0x32c   : > { %v732_v31 = vadd.f32 %v731_v19, %v725_v27 }
 0x32e   : > { %733 = vadd.xlane.f32.xlu0 %v732_v31 }
 0x3bb   : > { %v734_v34 = vpop.xlane.xlu0 %733 }
 0x3bc   : > { %v735_v35 = vrot.slane %v734_v34, 4 }
 0x3be   : > { %v736_v36 = vadd.f32 %v735_v35, %v734_v34 }
 0x3c0   : > { %v737_v37 = vrot.slane %v736_v36, 2 }
 0x3c2   : > { %v738_v38 = vadd.f32 %v737_v37, %v736_v36 }
 0x3c4   : > { %v739_v39 = vrot.slane %v738_v38, 1 }
 0x3c6   : > { %v740_v40 = vadd.f32 %v739_v39, %v738_v38 }
 0x3c8   : > { %1093 = vpush %v740_v40 }
 0x3f9   : > { %s1094_s25 = spop %1093 }
 0x3fa   : > { %s742_s27 = smax.f32 %s1241_s26, %s1094_s25 }
 0x3fb   : > { %v743_v41 = vstv %s742_s27 }
 0x3fc   : > { %1175 = vrsqrt.f32 %v743_v41 }
 0x406   : > { %v1176_v42 = vpop.eup %1175 }
 0x407   : > { %1095 = vpush %v1176_v42 }
 0x438   : > { %s1096_s6 = spop %1095 }
 0x439   : > { %v746_v43 = vstv %s1096_s6 }
 0x43a   : > { %v747_v44 = vmul.f32 %v746_v43, %v710_v12  ;;  %v748_v45 = vmul.f32 %v746_v43, %v711_v9  ;;  %v749_v46 = vmul.f32 %v746_v43, %v712_v20  ;;  %v750_v47 = vmul.f32 %v746_v43, %v713_v18 }
 0x43b   : > { %v751_v48 = vmul.f32 %v746_v43, %v714_v2  ;;  %v752_v49 = vmul.f32 %v746_v43, %v715_v3  ;;  %v753_v50 = vmul.f32 %v746_v43, %v716_v29  ;;  %v754_v51 = vmul.f32 %v746_v43, %v717_v14 }
 0x43c   : > { %755 = vst [vmem:[%s163_s4] sm:$0xff] %v747_v44  ;;  %756 = vst [vmem:[%s163_s4 + $0x8] sm:$0xff] %v748_v45 }
 0x43d   : > { %757 = vst [vmem:[%s163_s4 + $0x10] sm:$0xff] %v749_v46  ;;  %758 = vst [vmem:[%s163_s4 + $0x18] sm:$0xff] %v750_v47 }
 0x43e   : > { %759 = vst [vmem:[%s163_s4 + $0x20] sm:$0xff] %v751_v48  ;;  %760 = vst [vmem:[%s163_s4 + $0x28] sm:$0xff] %v752_v49 }
 0x43f   : > { %761 = vst [vmem:[%s163_s4 + $0x30] sm:$0xff] %v753_v50  ;;  %762 = vst [vmem:[%s163_s4 + $0x38] sm:$0xff] %v754_v51 }
 0x440   : > { %1190 = shalt.err (!%p1187_p3)
}
 0x441   : > { %s1191_s20 = scalar_lea.hbm %s1550_s9, 1024  ;;  %s1195_s26 = scalar_lea.hbm %s1598_s3, 2048 }
 0x442   : > { %p1192_p4 = scmp.ne.s32.totalorder %s1550_s9, %s1191_s20  ;;  %p1196_p9 = scmp.lt.u32.totalorder %s1550_s9, %s1598_s3 }
 0x443   : > { %p1197_p10 = scmp.lt.u32.totalorder %s1195_s26, %s1191_s20  ;;  %p1199_p12 = scmp.lt.u32.totalorder %s1191_s20, %s1550_s9 }
 0x444   : > { %p1193_p7 = pnand %p1192_p4, %p1303_p5 }
 0x445   : > { %p1198_p11 = por %p1197_p10, %p1196_p9 }
 0x446   : > { %p1194_p8 = pneg %p1193_p7 }
 0x447   : > { %p1200_p13 = por %p1199_p12, %p1198_p11 }
 0x449   : > { %p1201_p0 = pnand %p1200_p13, %p1194_p8 }
 0x44b   : > { %1204 = shalt.err (!%p1201_p0)
}
 0x44c   : > { %s1243_s29 = smov 128   ;;  %s1244_s30 = smov 8  }
 0x44d   : > { %1097 = dma.vmem_to_hbm [thread:$0]  (%p1303_p5), %s1552_s5, 1024, %s1550_s9, %s1554_s16, %s1243_s29, %s1243_s29, %s1244_s30  }
 0x44e PF: > { %p1103_p1 = scmp.ge.s32.totalorder %s1239_s15, 2  ;;  %s792_s4 = sand.u32 1, %s1227_s12  }
 0x44f   : > { %s793_s6 = scalar_lea.sflag [#allocation3], %s792_s4 }
 0x450   : > { %p1100_p2 = pnand %p1103_p1, %p1307_p6 }
 0x452   : > { %1222 = dma.done.wait (!%p1100_p2), %s793_s6, 1024  }
 0x453   : > { %1224 = vsyncadd (!%p1100_p2), %s793_s6, 4294966272  ;;  %p13_p3 = scmp.ge.s32.totalorder %s1290_s18, 4   ;;  %s1603_s12 = smov %s1231_s13 }
 0x454   : > { %s1604_s13 = smov %s1235_s14  ;;  %s1605_s14 = smov %s1301_s21 }
 0x455   : > { %s1606_s15 = smov %s1290_s18  ;;  %15 = sbr.rel (!%p13_p3) target bundleno = 3 (0x3), region = 67 }
 0x45c   :  { %798 = vsyncpa [#allocation3], 1 }
 0x45d   :  { %800 = vsyncpa [#allocation3 + $0x1], 1 }

</bundles_post_ra>
